<compile_context>
chip_gen: v5e
topology: v5e:2x2
jax: 0.10.0
libtpu: 0.0.40
codegen_flags: <defaults>
</compile_context>

<pallas_src>
import functools

import jax
import jax.numpy as jnp
from jax.experimental import pallas as pl
from jax.experimental.pallas import tpu as pltpu

_LANES = 128
_SUBLANES = 8
# 512x128 f32 = 256 KiB per tile -> fits the scoped-VMEM default on
# v5e (16 MiB) / v6e (32 MiB) / v7x (32 MiB of 64 MiB) with double-buffering.
_MAX_TILE_ROWS = 512


def _mean_plus_std_kernel(x_ref, o_ref, sum_acc, sumsq_acc, *, n_true):
    i = pl.program_id(0)

    @pl.when(i == 0)
    def _init():
        sum_acc[...] = jnp.zeros_like(sum_acc)
        sumsq_acc[...] = jnp.zeros_like(sumsq_acc)

    # (tile_rows, 128) lane/sublane-dense tile, accumulated in f32.
    x = x_ref[...].astype(jnp.float32)
    xr = x.reshape(-1, _SUBLANES, _LANES)        # vreg-aligned (k, 8, 128) view
    # Elementwise vreg adds only (VALU); no per-tile XLU reduction.
    sum_acc[...] += jnp.sum(xr, axis=0)
    sumsq_acc[...] += jnp.sum(xr * xr, axis=0)

    @pl.when(i == pl.num_programs(0) - 1)
    def _finalize():
        # Single O(1) cross-lane/sublane reduce at the very end.
        s = jnp.sum(sum_acc[...], keepdims=True)       # (1, 1)
        ss = jnp.sum(sumsq_acc[...], keepdims=True)    # (1, 1)
        mean = s / n_true
        # torch.std is unbiased (Bessel correction, ddof=1).
        var = (ss - n_true * mean * mean) / (n_true - 1.0)
        o_ref[...] = mean + jnp.sqrt(var)


@jax.jit
def mean_plus_std(x):
    """Pallas equivalent of torch.add(tensor.mean(), tensor.std()) -> scalar."""
    n_true = int(x.size)
    flat = x.reshape(-1)

    rows = -(-n_true // _LANES)                      # ceil-div to lane rows
    if rows >= _MAX_TILE_ROWS:
        tile_rows = _MAX_TILE_ROWS
    else:
        tile_rows = -(-rows // _SUBLANES) * _SUBLANES  # round up to sublane mult
    padded_rows = -(-rows // tile_rows) * tile_rows
    padded_n = padded_rows * _LANES
    if padded_n != n_true:
        # Zero padding is exact: zeros contribute nothing to sum/sumsq and the
        # true element count n_true is used for mean/var.
        flat = jnp.pad(flat, (0, padded_n - n_true))
    x2 = flat.reshape(padded_rows, _LANES)

    kernel = functools.partial(_mean_plus_std_kernel, n_true=float(n_true))
    # TODO(synk): on v7x, shard the reduction grid across both TensorCores
    # (core_map / parallel outer axis) and combine partial (sum, sumsq) pairs.
    out = pl.pallas_call(
        kernel,
        out_shape=jax.ShapeDtypeStruct((1, 1), jnp.float32),
        grid_spec=pltpu.PrefetchScalarGridSpec(
            num_scalar_prefetch=0,
            grid=(padded_rows // tile_rows,),
            in_specs=[pl.BlockSpec((tile_rows, _LANES), lambda i: (i, 0))],
            out_specs=pl.BlockSpec((1, 1), lambda i: (0, 0)),
            scratch_shapes=[
                pltpu.VMEM((_SUBLANES, _LANES), jnp.float32),
                pltpu.VMEM((_SUBLANES, _LANES), jnp.float32),
            ],
        ),
        compiler_params=pltpu.CompilerParams(
            dimension_semantics=("arbitrary",)),
    )(x2)
    return out[0, 0]


def pt_module_forward(inputs):
    """Forward pass of PtModule: list of tensors -> list of scalars."""
    return [mean_plus_std(t) for t in inputs]


if __name__ == "__main__":
    key = jax.random.PRNGKey(0)
    k0, k1, k2 = jax.random.split(key, 3)

    # Small deterministic example inputs (list of tensors, as the module expects).
    inputs = [
        jax.random.normal(k0, (2, 4, 16, 16), dtype=jnp.float32),
        jax.random.normal(k1, (8, 32), dtype=jnp.float32),
        jax.random.normal(k2, (4, 16), dtype=jnp.float32),
    ]

    results = pt_module_forward(inputs)
    results = [jax.block_until_ready(r) for r in results]

    # Correctness check against pure-JAX reference (mean + unbiased std).
    for x, r in zip(inputs, results):
        ref = jnp.mean(x) + jnp.std(x, ddof=1)
        assert jnp.allclose(r, ref, rtol=1e-4, atol=1e-4), (r, ref)

    print("KERNEL_OK")
</pallas_src>

<mosaic_0001>
module attributes {stable_mosaic.version = 11 : i64} {
  func.func @_mean_plus_std_kernel(%arg0: i32, %arg1: memref<16x128xf32, #tpu.memory_space<vmem>>, %arg2: memref<1x1xf32, #tpu.memory_space<vmem>>, %arg3: memref<8x128xf32, #tpu.memory_space<vmem>>, %arg4: memref<8x128xf32, #tpu.memory_space<vmem>>) attributes {dimension_semantics = [#tpu.dimension_semantics<arbitrary>], iteration_bounds = array<i64: 1>, scalar_prefetch = 0 : i64, scratch_operands = 2 : i64, tpu.core_type = #tpu.core_type<tc>, window_params = [{transform_indices = @transform_0, window_bounds = array<i64: 16, 128>}, {pipeline_mode = #tpu.pipeline_mode<synchronous>, transform_indices = @transform_1, window_bounds = array<i64: 1, 1>}]} {
    %c0_i32 = arith.constant 0 : i32
    %0 = arith.cmpi eq, %arg0, %c0_i32 : i32
    %1 = arith.extui %0 : i1 to i32
    %c0_i32_0 = arith.constant 0 : i32
    %2 = arith.cmpi ne, %1, %c0_i32_0 : i32
    scf.if %2 {
      %cst_13 = arith.constant 0.000000e+00 : f32
      %17 = vector.broadcast %cst_13 : f32 to vector<8x128xf32>
      %c0_14 = arith.constant 0 : index
      %c0_15 = arith.constant 0 : index
      %18 = vector.load %arg3[%c0_14, %c0_15] : memref<8x128xf32, #tpu.memory_space<vmem>>, vector<8x128xf32>
      tpu.vector_store %arg3[%c0_14, %c0_15], %17 {strides = array<i32>} : memref<8x128xf32, #tpu.memory_space<vmem>>, vector<8x128xf32>,
      %cst_16 = arith.constant 0.000000e+00 : f32
      %19 = vector.broadcast %cst_16 : f32 to vector<8x128xf32>
      %c0_17 = arith.constant 0 : index
      %c0_18 = arith.constant 0 : index
      %20 = vector.load %arg4[%c0_17, %c0_18] : memref<8x128xf32, #tpu.memory_space<vmem>>, vector<8x128xf32>
      tpu.vector_store %arg4[%c0_17, %c0_18], %19 {strides = array<i32>} : memref<8x128xf32, #tpu.memory_space<vmem>>, vector<8x128xf32>,
    } else {
    }
    %c0 = arith.constant 0 : index
    %c0_1 = arith.constant 0 : index
    %3 = vector.load %arg1[%c0, %c0_1] : memref<16x128xf32, #tpu.memory_space<vmem>>, vector<16x128xf32>
    %4 = vector.shape_cast %3 : vector<16x128xf32> to vector<2x8x128xf32>
    %c0_2 = arith.constant 0 : index
    %c0_3 = arith.constant 0 : index
    %5 = vector.load %arg3[%c0_2, %c0_3] : memref<8x128xf32, #tpu.memory_space<vmem>>, vector<8x128xf32>
    %cst = arith.constant dense<0.000000e+00> : vector<8x128xf32>
    %6 = vector.multi_reduction <add>, %4, %cst [0] : vector<2x8x128xf32> to vector<8x128xf32>
    %7 = arith.addf %5, %6 : vector<8x128xf32>
    %c0_4 = arith.constant 0 : index
    %c0_5 = arith.constant 0 : index
    %8 = vector.load %arg3[%c0_4, %c0_5] : memref<8x128xf32, #tpu.memory_space<vmem>>, vector<8x128xf32>
    tpu.vector_store %arg3[%c0_4, %c0_5], %7 {strides = array<i32>} : memref<8x128xf32, #tpu.memory_space<vmem>>, vector<8x128xf32>,
    %c0_6 = arith.constant 0 : index
    %c0_7 = arith.constant 0 : index
    %9 = vector.load %arg4[%c0_6, %c0_7] : memref<8x128xf32, #tpu.memory_space<vmem>>, vector<8x128xf32>
    %10 = arith.mulf %4, %4 : vector<2x8x128xf32>
    %cst_8 = arith.constant dense<0.000000e+00> : vector<8x128xf32>
    %11 = vector.multi_reduction <add>, %10, %cst_8 [0] : vector<2x8x128xf32> to vector<8x128xf32>
    %12 = arith.addf %9, %11 : vector<8x128xf32>
    %c0_9 = arith.constant 0 : index
    %c0_10 = arith.constant 0 : index
    %13 = vector.load %arg4[%c0_9, %c0_10] : memref<8x128xf32, #tpu.memory_space<vmem>>, vector<8x128xf32>
    tpu.vector_store %arg4[%c0_9, %c0_10], %12 {strides = array<i32>} : memref<8x128xf32, #tpu.memory_space<vmem>>, vector<8x128xf32>,
    %c0_i32_11 = arith.constant 0 : i32
    %14 = arith.cmpi eq, %arg0, %c0_i32_11 : i32
    %15 = arith.extui %14 : i1 to i32
    %c0_i32_12 = arith.constant 0 : i32
    %16 = arith.cmpi ne, %15, %c0_i32_12 : i32
    scf.if %16 {
      %c0_13 = arith.constant 0 : index
      %c0_14 = arith.constant 0 : index
      %17 = vector.load %arg3[%c0_13, %c0_14] : memref<8x128xf32, #tpu.memory_space<vmem>>, vector<8x128xf32>
      %18 = vector.shape_cast %17 : vector<8x128xf32> to vector<1x8x128xf32>
      %cst_15 = arith.constant dense<0.000000e+00> : vector<1xf32>
      %19 = vector.multi_reduction <add>, %18, %cst_15 [1, 2] : vector<1x8x128xf32> to vector<1xf32>
      %20 = vector.shape_cast %19 : vector<1xf32> to vector<1x1x1xf32>
      %21 = vector.extract %20[0, 0, 0] : f32 from vector<1x1x1xf32>
      %22 = vector.broadcast %21 : f32 to vector<1x1xf32>
      %c0_16 = arith.constant 0 : index
      %c0_17 = arith.constant 0 : index
      %23 = vector.load %arg4[%c0_16, %c0_17] : memref<8x128xf32, #tpu.memory_space<vmem>>, vector<8x128xf32>
      %24 = vector.shape_cast %23 : vector<8x128xf32> to vector<1x8x128xf32>
      %cst_18 = arith.constant dense<0.000000e+00> : vector<1xf32>
      %25 = vector.multi_reduction <add>, %24, %cst_18 [1, 2] : vector<1x8x128xf32> to vector<1xf32>
      %26 = vector.shape_cast %25 : vector<1xf32> to vector<1x1x1xf32>
      %27 = vector.extract %26[0, 0, 0] : f32 from vector<1x1x1xf32>
      %28 = vector.broadcast %27 : f32 to vector<1x1xf32>
      %cst_19 = arith.constant 2.048000e+03 : f32
      %29 = vector.broadcast %cst_19 : f32 to vector<1x1xf32>
      %30 = arith.divf %22, %29 : vector<1x1xf32>
      %cst_20 = arith.constant 2.048000e+03 : f32
      %31 = vector.broadcast %cst_20 : f32 to vector<1x1xf32>
      %32 = arith.mulf %31, %30 : vector<1x1xf32>
      %33 = arith.mulf %32, %30 : vector<1x1xf32>
      %34 = arith.subf %28, %33 : vector<1x1xf32>
      %cst_21 = arith.constant 2.047000e+03 : f32
      %35 = vector.broadcast %cst_21 : f32 to vector<1x1xf32>
      %36 = arith.divf %34, %35 : vector<1x1xf32>
      %37 = math.sqrt %36 : vector<1x1xf32>
      %38 = arith.addf %30, %37 : vector<1x1xf32>
      %c0_22 = arith.constant 0 : index
      %c0_23 = arith.constant 0 : index
      %39 = vector.load %arg2[%c0_22, %c0_23] : memref<1x1xf32, #tpu.memory_space<vmem>>, vector<1x1xf32>
      tpu.vector_store %arg2[%c0_22, %c0_23], %38 {strides = array<i32>} : memref<1x1xf32, #tpu.memory_space<vmem>>, vector<1x1xf32>,
    } else {
    }
    return
  }
  func.func @transform_0(%arg0: i32) -> (i32, i32) {
    %c0_i32 = arith.constant 0 : i32
    %c0_i32_0 = arith.constant 0 : i32
    return %arg0, %c0_i32 : i32, i32
  }
  func.func @transform_1(%arg0: i32) -> (i32, i32) {
    %c0_i32 = arith.constant 0 : i32
    %c0_i32_0 = arith.constant 0 : i32
    %c0_i32_1 = arith.constant 0 : i32
    return %c0_i32, %c0_i32_0 : i32, i32
  }
}

</mosaic_0001>

<bundles_post_ra>
// kernel: mean_plus_std.1
= control target key start
LH: loop header
LB: loop body
LE: loop exit
PB: predicated region body
PF: predicated region fallthrough
CT: control target
= control target key end

     0   :  { %s163_s0 = inlined_call_operand.vmem [shape: f32[16,128], index: 0, kind: input, shape index: {}]   ;;  %s164_s1 = inlined_call_operand.hbm [shape: f32[1,1], index: 1, kind: output, shape index: {}]  }
   0x1   :  { %v15_v0 = vld [vmem:[%s163_s0] sm:$0xff]  ;;  %v16_v1 = vld [vmem:[%s163_s0 + $0x8] sm:$0xff] }
   0x2   :  { %6 = vsyncpa [#allocation5], 0  ;;  %v18_v2 = vadd.f32 %v16_v1, %v15_v0  ;;  %v22_v3 = vmul.f32 %v15_v0, %v15_v0  ;;  %v23_v4 = vmul.f32 %v16_v1, %v16_v1  ;;  %v141_v20 = vmov 2048.0   ;;  %s143_s11 = smov [#allocation4]   ;;  %s93_s15 = sshll.u32 %s164_s1, 4  ;;  %s94_s15 = int_to_ptr.hbm [resolvable:$true] %s93_s15 }
   0x3   :  { %109 = vrcp.f32 %v141_v20  ;;  %v142_v23 = vmov 2047.0   ;;  %s91_s12 = sshll.u32 %s143_s11, 4  ;;  %vm84_vm4 = vcmask 0   ;;  %s92_s12 = int_to_ptr.vmem [resolvable:$true] %s91_s12 }
   0x4   :  { %31 = vadd.xlane.f32.xlu0 %v18_v2  ;;  %v24_v5 = vadd.f32 %v23_v4, %v22_v3  ;;  %111 = vrcp.f32 %v142_v23 }
   0x9   :  { %v110_v21 = vpop.eup %109 }
   0xa   :  { %v53_v22 = vmul.f32 2048.0, %v110_v21  ;;  %v112_v25 = vpop.eup %111  ;;  %vm57_vm0 = vweird.f32 %v110_v21 }
   0xb   :  { %v64_v27 = vmul.f32 2047.0, %v112_v25  ;;  %vm68_vm1 = vweird.f32 %v112_v25 }
   0xc   :  { %42 = vadd.xlane.f32.xlu0 %v24_v5  ;;  %v54_v24 = vsub.f32 1.0, %v53_v22 }
   0xd   :  { %v65_v29 = vsub.f32 1.0, %v64_v27 }
   0xe   :  { %v55_v26 = vmul.f32 %v110_v21, %v54_v24 }
   0xf   :  { %v66_v32 = vmul.f32 %v112_v25, %v65_v29 }
  0x10   :  { %v56_v28 = vadd.f32 %v110_v21, %v55_v26 }
  0x11   :  { %v67_v35 = vadd.f32 %v112_v25, %v66_v32 }
  0x12   :  { %v58_v30 = vsel %vm57_vm0, %v110_v21, %v56_v28 }
  0x13   :  { %v69_v38 = vsel %vm68_vm1, %v112_v25, %v67_v35 }
  0x77   :  { %v32_v6 = vpop.xlane.xlu0 %31 }
  0x78   :  { %v33_v7 = vrot.slane %v32_v6, 4 }
  0x7a   :  { %v34_v8 = vadd.f32 %v33_v7, %v32_v6 }
  0x7c   :  { %v35_v9 = vrot.slane %v34_v8, 2 }
  0x7e   :  { %v36_v10 = vadd.f32 %v35_v9, %v34_v8 }
  0x7f   :  { %v43_v11 = vpop.xlane.xlu0 %42 }
  0x80   :  { %v44_v12 = vrot.slane %v43_v11, 4  ;;  %v37_v13 = vrot.slane %v36_v10, 1 }
  0x82   :  { %v45_v14 = vadd.f32 %v44_v12, %v43_v11  ;;  %v38_v15 = vadd.f32 %v37_v13, %v36_v10 }
  0x84   :  { %v46_v16 = vrot.slane %v45_v14, 2  ;;  %102 = vpush %v38_v15 }
  0x86   :  { %v47_v17 = vadd.f32 %v46_v16, %v45_v14 }
  0x88   :  { %v48_v18 = vrot.slane %v47_v17, 1 }
  0x8a   :  { %v49_v19 = vadd.f32 %v48_v18, %v47_v17 }
  0x8c   :  { %104 = vpush %v49_v19 }
  0xb5   :  { %s103_s0 = spop %102 }
  0xb6   :  { %v40_v31 = vstv %s103_s0 }
  0xb7   :  { %v59_v33 = vmul.f32 %v58_v30, %v40_v31 }
  0xb9   :  { %v60_v34 = vmul.f32 2048.0, %v59_v33 }
  0xbb   :  { %v61_v36 = vmul.f32 %v60_v34, %v59_v33 }
  0xbd   :  { %s105_s10 = spop %104 }
  0xbe   :  { %v51_v37 = vstv %s105_s10 }
  0xbf   :  { %v62_v39 = vsub.f32 %v51_v37, %v61_v36 }
  0xc1   :  { %v70_v40 = vmul.f32 %v69_v38, %v62_v39 }
  0xc3   :  { %113 = vrsqrt.f32 %v70_v40  ;;  %vm78_vm2 = vcmp.eq.f32.partialorder %v70_v40, inf  ;;  %v81_v48 = vand.u32 2147483648, %v70_v40  ;;  %vm80_vm3 = vcmp.eq.f32.partialorder %v70_v40, 0.0 }
  0xc9   :  { %v114_v41 = vpop.eup %113 }
  0xca   :  { %v72_v42 = vmul.f32 %v114_v41, %v70_v40 }
  0xcc   :  { %v73_v43 = vmul.f32 %v114_v41, %v72_v42 }
  0xce   :  { %v74_v44 = vmul.f32 0.5, %v73_v43 }
  0xd0   :  { %v75_v45 = vsub.f32 1.5, %v74_v44 }
  0xd2   :  { %v76_v46 = vmul.f32 %v114_v41, %v75_v45 }
  0xd4   :  { %v77_v47 = vmul.f32 %v76_v46, %v70_v40 }
  0xd6   :  { %v79_v49 = vsel %vm78_vm2, %v70_v40, %v77_v47 }
  0xd7   :  { %v82_v50 = vsel %vm80_vm3, %v81_v48, %v79_v49 }
  0xd8   :  { %v83_v51 = vadd.f32 %v82_v50, %v59_v33 }
  0xda   :  { %85 = vst.msk [vmem:[#allocation4] sm:$0x1] %vm84_vm4, %v83_v51 }
  0xdb   :  { %96 = dma.vmem_to_hbm [thread:$0]  %s92_s12, 16, %s94_s15, [#allocation5]  }
  0xdc   :  { %139 = dma.done.wait [#allocation5], 16  }
  0xdd   :  { %140 = vsyncadd [#allocation5], 4294967280 }
  0xde   :  { %101 = vsyncpa [#allocation5], 1 }

</bundles_post_ra>
